<compile_context>
chip_gen: v5e
topology: v5e:2x2
jax: 0.10.0
libtpu: 0.0.40
codegen_flags: <defaults>
</compile_context>

<pallas_src>
import functools

import jax
import jax.numpy as jnp
from jax.experimental import pallas as pl
from jax.experimental.pallas import tpu as pltpu

NUM_LAYERS = 2
NUM_NEURONS = 32
INPUT_SIZE = 3
OUTPUT_SIZE = 2
BN_EPS = 1e-5

# Path-selection / tiling thresholds, sized so worst-case live VMEM stays well
# under the 64 MiB physical per-TC VMEM of v7x (v5e/v6e have 128 MiB).
SINGLE_PASS_MAX_B = 32768      # whole batch resident -> one pass, no phases
MAX_TILE_B = 16384             # batch tile for the 3-phase path
X_RESIDENT_MAX_B = 262144      # keep x^T resident across phases up to this B

_ACTIVATIONS = {
    "ReLU": lambda z: jnp.maximum(z, 0.0),
    "ELU": jax.nn.elu,
    "LeakyReLU": jax.nn.leaky_relu,
    "Tanh": jnp.tanh,
    "Sigmoid": jax.nn.sigmoid,
}


def _round_up(n, m):
    return (n + m - 1) // m * m


def _layer1_vpu(w1, x):
    """z1 = W1 @ x via 3 broadcast FMAs on the VPU (K=3 would waste the MXU)."""
    return (w1[:, 0:1] * x[0:1, :]
            + w1[:, 1:2] * x[1:2, :]
            + w1[:, 2:3] * x[2:3, :])


def _bf16_dot(w, h):
    """MXU matmul with bf16 operands, f32 accumulation."""
    return jnp.dot(w.astype(jnp.bfloat16), h.astype(jnp.bfloat16),
                   preferred_element_type=jnp.float32)


# ---------------------------------------------------------------------------
# Single-pass kernel: whole (padded) batch resident in VMEM, BN stats computed
# directly on the resident [32, B] pre-activations (centered variance).
# ---------------------------------------------------------------------------
def _single_pass_kernel(x_ref, w1_ref, w2_ref, w3_ref, bn_ref, b3_ref, out_ref,
                        *, batch_size, activation):
    act = _ACTIVATIONS[activation]
    inv_b = 1.0 / float(batch_size)

    x = x_ref[...]                                   # [3, B_pad]
    b_pad = x.shape[1]
    if b_pad == batch_size:
        valid = None
    else:
        col = jax.lax.broadcasted_iota(jnp.int32, (1, b_pad), 1)
        valid = (col < batch_size).astype(jnp.float32)

    def batchnorm(z, gamma, beta):
        # Padded columns of z are exactly zero (zero-padded x / masked h1, and
        # the pre-BN bias is dropped), so plain sums with the true-B normalizer
        # are exact.  Variance uses the centered form for stability.
        mu = jnp.sum(z, axis=1, keepdims=True) * inv_b
        zc = z - mu
        zc_s = zc if valid is None else zc * valid
        var = jnp.sum(zc_s * zc_s, axis=1, keepdims=True) * inv_b
        scale = gamma * jax.lax.rsqrt(var + BN_EPS)
        return zc * scale + beta

    z1 = _layer1_vpu(w1_ref[...], x)                               # [32, B_pad]
    h1 = act(batchnorm(z1, bn_ref[:, 0:1], bn_ref[:, 1:2]))
    h1 = h1 if valid is None else h1 * valid        # keep padded z2 columns 0
    z2 = _bf16_dot(w2_ref[...], h1)                                # [32, B_pad]
    h2 = act(batchnorm(z2, bn_ref[:, 2:3], bn_ref[:, 3:4]))
    out = _bf16_dot(w3_ref[...], h2)                               # [2, B_pad]
    out_ref[...] = (out + b3_ref[...]).astype(out_ref.dtype)


# ---------------------------------------------------------------------------
# 3-phase tiled kernel for batches too large to keep resident:
#   phase 0: accumulate sum / sum-sq of z1 over all tiles
#   phase 1: recompute z1, apply BN1+act, accumulate stats of z2
#   phase 2: recompute z1, z2, apply BN2+act, final Linear -> out
# Matmuls are tiny (K=3 / 32), so recompute is far cheaper than spilling
# [32, B] intermediates to HBM.  Stats live in one [32, 4] VMEM scratch.
# ---------------------------------------------------------------------------
def _phased_kernel(x_ref, w1_ref, w2_ref, w3_ref, bn_ref, b3_ref, out_ref,
                   stats_ref, *, batch_size, tile_b, x_resident, activation):
    act = _ACTIVATIONS[activation]
    phase = pl.program_id(0)
    t = pl.program_id(1)
    inv_b = 1.0 / float(batch_size)

    @pl.when(jnp.logical_and(phase == 0, t == 0))
    def _():
        stats_ref[...] = jnp.zeros_like(stats_ref)

    if x_resident:
        start = pl.multiple_of(t * tile_b, tile_b)
        x = x_ref[:, pl.ds(start, tile_b)]           # slice the resident x^T
    else:
        x = x_ref[...]                               # per-tile DMA'd x^T

    z1 = _layer1_vpu(w1_ref[...], x)                 # [32, tile_b]

    @pl.when(phase == 0)
    def _():
        # Padded columns of z1 are exactly zero -> no masking needed here.
        stats_ref[:, 0:1] += jnp.sum(z1, axis=1, keepdims=True)
        stats_ref[:, 1:2] += jnp.sum(z1 * z1, axis=1, keepdims=True)

    @pl.when(phase >= 1)
    def _():
        mu1 = stats_ref[:, 0:1] * inv_b
        var1 = stats_ref[:, 1:2] * inv_b - mu1 * mu1
        scale1 = bn_ref[:, 0:1] * jax.lax.rsqrt(var1 + BN_EPS)
        shift1 = bn_ref[:, 1:2] - mu1 * scale1
        h1 = act(z1 * scale1 + shift1)               # [32, tile_b]

        @pl.when(phase == 1)
        def _():
            # Zero padded lanes so they don't pollute the BN2 statistics.
            col = t * tile_b + jax.lax.broadcasted_iota(
                jnp.int32, (1, tile_b), 1)
            h1m = h1 * (col < batch_size).astype(h1.dtype)
            z2 = _bf16_dot(w2_ref[...], h1m)
            stats_ref[:, 2:3] += jnp.sum(z2, axis=1, keepdims=True)
            stats_ref[:, 3:4] += jnp.sum(z2 * z2, axis=1, keepdims=True)

        @pl.when(phase == 2)
        def _():
            z2 = _bf16_dot(w2_ref[...], h1)
            mu2 = stats_ref[:, 2:3] * inv_b
            var2 = stats_ref[:, 3:4] * inv_b - mu2 * mu2
            scale2 = bn_ref[:, 2:3] * jax.lax.rsqrt(var2 + BN_EPS)
            shift2 = bn_ref[:, 3:4] - mu2 * scale2
            h2 = act(z2 * scale2 + shift2)
            out = _bf16_dot(w3_ref[...], h2)         # [2, tile_b]
            out_ref[...] = (out + b3_ref[...]).astype(out_ref.dtype)


# ---------------------------------------------------------------------------
# Wrappers
# ---------------------------------------------------------------------------
def _vmem_limit_bytes(tile_lanes, resident_x_lanes):
    # Conservative live-footprint estimate (no temp reuse assumed):
    #  ~6 live [32, tile] f32/bf16 temporaries + double-buffered x/out tiles
    #  (8-sublane padded) + resident x^T (2 buffers) + headroom for Mosaic.
    per_lane = 6 * NUM_NEURONS * 4 + 2 * 8 * 4 + 2 * 8 * 4
    est = tile_lanes * per_lane + resident_x_lanes * 2 * 8 * 4
    est += 8 * 1024 * 1024
    return int(min(max(est, 32 * 1024 * 1024), 44 * 1024 * 1024))


def _cost_estimate(batch, x_reads, z1_passes, z2_passes):
    flops = 2 * batch * (INPUT_SIZE * NUM_NEURONS * z1_passes
                         + NUM_NEURONS * NUM_NEURONS * z2_passes
                         + NUM_NEURONS * OUTPUT_SIZE)
    param_elems = (NUM_NEURONS * INPUT_SIZE + NUM_NEURONS * NUM_NEURONS
                   + OUTPUT_SIZE * NUM_NEURONS + NUM_NEURONS * 4 + OUTPUT_SIZE)
    bytes_accessed = 4 * (x_reads * batch * INPUT_SIZE
                          + batch * OUTPUT_SIZE + param_elems)
    return pl.CostEstimate(flops=flops, transcendentals=4 * NUM_NEURONS,
                           bytes_accessed=bytes_accessed)


def neural_net_forward_feature_major(xT, params, activation="ReLU", *,
                                     force_tiled=False, tile_override=None):
    """xT: [3, B] float32 (feature-major).  Returns [2, B] float32."""
    B = xT.shape[1]
    bn = jnp.concatenate(
        [params["g1"], params["be1"], params["g2"], params["be2"]], axis=1)
    weights = (params["w1"], params["w2"], params["w3"], bn, params["b3"])

    use_single_pass = (not force_tiled) and (B <= SINGLE_PASS_MAX_B)

    if use_single_pass:
        b_pad = _round_up(B, 128)
        xp = xT if b_pad == B else jnp.pad(xT, ((0, 0), (0, b_pad - B)))
        kernel = functools.partial(_single_pass_kernel, batch_size=B,
                                   activation=activation)
        out = pl.pallas_call(
            kernel,
            out_shape=jax.ShapeDtypeStruct((OUTPUT_SIZE, b_pad), jnp.float32),
            grid_spec=pltpu.PrefetchScalarGridSpec(
                num_scalar_prefetch=0,
                grid=(1,),
                in_specs=[
                    pl.BlockSpec((INPUT_SIZE, b_pad), lambda i: (0, 0)),
                    pl.BlockSpec((NUM_NEURONS, INPUT_SIZE), lambda i: (0, 0)),
                    pl.BlockSpec((NUM_NEURONS, NUM_NEURONS), lambda i: (0, 0)),
                    pl.BlockSpec((OUTPUT_SIZE, NUM_NEURONS), lambda i: (0, 0)),
                    pl.BlockSpec((NUM_NEURONS, 4), lambda i: (0, 0)),
                    pl.BlockSpec((OUTPUT_SIZE, 1), lambda i: (0, 0)),
                ],
                out_specs=pl.BlockSpec((OUTPUT_SIZE, b_pad), lambda i: (0, 0)),
            ),
            compiler_params=pltpu.CompilerParams(
                dimension_semantics=("arbitrary",),
                vmem_limit_bytes=_vmem_limit_bytes(b_pad, 0)),
            cost_estimate=_cost_estimate(b_pad, 1, 1, 1),
        )(xp, *weights)
        return out[:, :B]

    # ---- tiled 3-phase path ----
    tile_b = tile_override if tile_override is not None else MAX_TILE_B
    tile_b = _round_up(max(128, min(int(tile_b), MAX_TILE_B)), 128)
    # Shrink the tile until the padded batch has >= 2 tiles (pipeline overlap).
    while tile_b > 128 and _round_up(B, tile_b) // tile_b < 2:
        tile_b = _round_up(tile_b // 2, 128)

    b_pad = _round_up(B, tile_b)
    n_tiles = b_pad // tile_b
    xp = xT if b_pad == B else jnp.pad(xT, ((0, 0), (0, b_pad - B)))
    x_resident = b_pad <= X_RESIDENT_MAX_B

    if x_resident:
        # x^T loaded once and kept resident across all 3 phases.
        x_spec = pl.BlockSpec((INPUT_SIZE, b_pad), lambda p, t: (0, 0))
    else:
        x_spec = pl.BlockSpec((INPUT_SIZE, tile_b), lambda p, t: (0, t))

    # Output block index is frozen at (0, 0) during phases 0/1 so the stale
    # VMEM buffer is never written back; each tile is written to HBM exactly
    # once, after its phase-2 store.
    out_spec = pl.BlockSpec((OUTPUT_SIZE, tile_b),
                            lambda p, t: (0, jnp.where(p == 2, t, 0)))

    kernel = functools.partial(_phased_kernel, batch_size=B, tile_b=tile_b,
                               x_resident=x_resident, activation=activation)

    out = pl.pallas_call(
        kernel,
        out_shape=jax.ShapeDtypeStruct((OUTPUT_SIZE, b_pad), jnp.float32),
        grid_spec=pltpu.PrefetchScalarGridSpec(
            num_scalar_prefetch=0,
            grid=(3, n_tiles),                      # (phase, batch tile)
            in_specs=[
                x_spec,
                pl.BlockSpec((NUM_NEURONS, INPUT_SIZE), lambda p, t: (0, 0)),
                pl.BlockSpec((NUM_NEURONS, NUM_NEURONS), lambda p, t: (0, 0)),
                pl.BlockSpec((OUTPUT_SIZE, NUM_NEURONS), lambda p, t: (0, 0)),
                pl.BlockSpec((NUM_NEURONS, 4), lambda p, t: (0, 0)),
                pl.BlockSpec((OUTPUT_SIZE, 1), lambda p, t: (0, 0)),
            ],
            out_specs=out_spec,
            scratch_shapes=[pltpu.VMEM((NUM_NEURONS, 4), jnp.float32)],
        ),
        compiler_params=pltpu.CompilerParams(
            # Both axes carry the full-batch BN stat reduction -> sequential.
            dimension_semantics=("arbitrary", "arbitrary"),
            vmem_limit_bytes=_vmem_limit_bytes(
                tile_b, b_pad if x_resident else 0)),
        cost_estimate=_cost_estimate(b_pad, 1 if x_resident else 3, 3, 2),
    )(xp, *weights)
    return out[:, :B]


def neural_net_forward(x, params, activation="ReLU", *, force_tiled=False,
                       tile_override=None):
    """x: [B, 3] float32 (batch-major, like the PyTorch module) -> [B, 2]."""
    out_t = neural_net_forward_feature_major(
        x.T, params, activation, force_tiled=force_tiled,
        tile_override=tile_override)
    return out_t.T


# ---------------------------------------------------------------------------
# Parameters / reference
# ---------------------------------------------------------------------------
def init_params(key):
    """Shapes matching the PyTorch module.  Linear weights are torch-native
    [out, in]; biases / BN params stored as [out, 1] columns.  b1/b2 exist for
    fidelity but are not passed to the kernels (cancelled by BN mean)."""
    ks = jax.random.split(key, 3)

    def lin(k, fan_in, fan_out):
        bound = 1.0 / jnp.sqrt(float(fan_in))
        kw, kb = jax.random.split(k)
        w = jax.random.uniform(kw, (fan_out, fan_in), jnp.float32, -bound, bound)
        b = jax.random.uniform(kb, (fan_out, 1), jnp.float32, -bound, bound)
        return w, b

    w1, b1 = lin(ks[0], INPUT_SIZE, NUM_NEURONS)
    w2, b2 = lin(ks[1], NUM_NEURONS, NUM_NEURONS)
    w3, b3 = lin(ks[2], NUM_NEURONS, OUTPUT_SIZE)
    ones = jnp.ones((NUM_NEURONS, 1), jnp.float32)
    zeros = jnp.zeros((NUM_NEURONS, 1), jnp.float32)
    return {
        "w1": w1, "b1": b1, "g1": ones, "be1": zeros,
        "w2": w2, "b2": b2, "g2": ones, "be2": zeros,
        "w3": w3, "b3": b3,
    }


def _reference_forward(x, params, activation="ReLU"):
    """Pure-JAX reference matching the PyTorch module (training-mode BN)."""
    act = _ACTIVATIONS[activation]

    def layer(h, w, b, g, be):
        z = h @ w.T + b[:, 0]
        mu = jnp.mean(z, axis=0)
        var = jnp.mean((z - mu) ** 2, axis=0)
        zn = (z - mu) / jnp.sqrt(var + BN_EPS)
        return act(zn * g[:, 0] + be[:, 0])

    h = layer(x, params["w1"], params["b1"], params["g1"], params["be1"])
    h = layer(h, params["w2"], params["b2"], params["g2"], params["be2"])
    return h @ params["w3"].T + params["b3"][:, 0]


if __name__ == "__main__":
    key = jax.random.PRNGKey(0)
    k1, k2, kp = jax.random.split(key, 3)
    params = init_params(kp)

    # 1) Single-pass fast path (whole batch resident in VMEM).
    b_small = 256
    x_small = jax.random.normal(k1, (b_small, INPUT_SIZE), jnp.float32)
    out_small = jax.block_until_ready(neural_net_forward(x_small, params, "ReLU"))
    ref_small = _reference_forward(x_small, params, "ReLU")
    assert out_small.shape == (b_small, OUTPUT_SIZE), out_small.shape
    assert bool(jnp.all(jnp.isfinite(out_small)))
    assert bool(jnp.allclose(out_small, ref_small, rtol=2e-2, atol=2e-2)), \
        float(jnp.max(jnp.abs(out_small - ref_small)))

    # 2) Force the tiled 3-phase path with a non-128-multiple batch so the
    #    padding + lane masking + resident-x + phased-BN machinery is exercised.
    b_odd = 300
    x_odd = jax.random.normal(k2, (b_odd, INPUT_SIZE), jnp.float32)
    out_odd = jax.block_until_ready(
        neural_net_forward(x_odd, params, "ReLU",
                           force_tiled=True, tile_override=128))
    ref_odd = _reference_forward(x_odd, params, "ReLU")
    assert out_odd.shape == (b_odd, OUTPUT_SIZE), out_odd.shape
    assert bool(jnp.all(jnp.isfinite(out_odd)))
    assert bool(jnp.allclose(out_odd, ref_odd, rtol=2e-2, atol=2e-2)), \
        float(jnp.max(jnp.abs(out_odd - ref_odd)))

    print("KERNEL_OK")
</pallas_src>

<mosaic_0001>
module attributes {stable_mosaic.version = 11 : i64} {
  func.func @_single_pass_kernel(%arg0: i32, %arg1: memref<3x256xf32, #tpu.memory_space<vmem>>, %arg2: memref<32x3xf32, #tpu.memory_space<vmem>>, %arg3: memref<32x32xf32, #tpu.memory_space<vmem>>, %arg4: memref<2x32xf32, #tpu.memory_space<vmem>>, %arg5: memref<32x4xf32, #tpu.memory_space<vmem>>, %arg6: memref<2x1xf32, #tpu.memory_space<vmem>>, %arg7: memref<2x256xf32, #tpu.memory_space<vmem>>) attributes {dimension_semantics = [#tpu.dimension_semantics<arbitrary>], iteration_bounds = array<i64: 1>, scalar_prefetch = 0 : i64, scratch_operands = 0 : i64, tpu.core_type = #tpu.core_type<tc>, window_params = [{pipeline_mode = #tpu.pipeline_mode<synchronous>, transform_indices = @transform_0, window_bounds = array<i64: 3, 256>}, {pipeline_mode = #tpu.pipeline_mode<synchronous>, transform_indices = @transform_1, window_bounds = array<i64: 32, 3>}, {pipeline_mode = #tpu.pipeline_mode<synchronous>, transform_indices = @transform_2, window_bounds = array<i64: 32, 32>}, {pipeline_mode = #tpu.pipeline_mode<synchronous>, transform_indices = @transform_3, window_bounds = array<i64: 2, 32>}, {pipeline_mode = #tpu.pipeline_mode<synchronous>, transform_indices = @transform_4, window_bounds = array<i64: 32, 4>}, {pipeline_mode = #tpu.pipeline_mode<synchronous>, transform_indices = @transform_5, window_bounds = array<i64: 2, 1>}, {pipeline_mode = #tpu.pipeline_mode<synchronous>, transform_indices = @transform_6, window_bounds = array<i64: 2, 256>}]} {
    %c0 = arith.constant 0 : index
    %c0_0 = arith.constant 0 : index
    %0 = vector.load %arg1[%c0, %c0_0] : memref<3x256xf32, #tpu.memory_space<vmem>>, vector<3x256xf32>
    %c0_1 = arith.constant 0 : index
    %c0_2 = arith.constant 0 : index
    %1 = vector.load %arg2[%c0_1, %c0_2] : memref<32x3xf32, #tpu.memory_space<vmem>>, vector<32x3xf32>
    %2 = vector.extract_strided_slice %1 {offsets = [0, 0], sizes = [32, 1], strides = [1, 1]} : vector<32x3xf32> to vector<32x1xf32>
    %3 = vector.extract_strided_slice %0 {offsets = [0, 0], sizes = [1, 256], strides = [1, 1]} : vector<3x256xf32> to vector<1x256xf32>
    %4 = vector.broadcast %2 : vector<32x1xf32> to vector<32x256xf32>
    %5 = vector.broadcast %3 : vector<1x256xf32> to vector<32x256xf32>
    %6 = arith.mulf %4, %5 : vector<32x256xf32>
    %7 = vector.extract_strided_slice %1 {offsets = [0, 1], sizes = [32, 1], strides = [1, 1]} : vector<32x3xf32> to vector<32x1xf32>
    %8 = vector.extract_strided_slice %0 {offsets = [1, 0], sizes = [1, 256], strides = [1, 1]} : vector<3x256xf32> to vector<1x256xf32>
    %9 = vector.broadcast %7 : vector<32x1xf32> to vector<32x256xf32>
    %10 = vector.broadcast %8 : vector<1x256xf32> to vector<32x256xf32>
    %11 = arith.mulf %9, %10 : vector<32x256xf32>
    %12 = arith.addf %6, %11 : vector<32x256xf32>
    %13 = vector.extract_strided_slice %1 {offsets = [0, 2], sizes = [32, 1], strides = [1, 1]} : vector<32x3xf32> to vector<32x1xf32>
    %14 = vector.extract_strided_slice %0 {offsets = [2, 0], sizes = [1, 256], strides = [1, 1]} : vector<3x256xf32> to vector<1x256xf32>
    %15 = vector.broadcast %13 : vector<32x1xf32> to vector<32x256xf32>
    %16 = vector.broadcast %14 : vector<1x256xf32> to vector<32x256xf32>
    %17 = arith.mulf %15, %16 : vector<32x256xf32>
    %18 = arith.addf %12, %17 : vector<32x256xf32>
    %c0_3 = arith.constant 0 : index
    %c0_4 = arith.constant 0 : index
    %19 = vector.load %arg5[%c0_3, %c0_4] : memref<32x4xf32, #tpu.memory_space<vmem>>, vector<32x1xf32>
    %c0_5 = arith.constant 0 : index
    %c1 = arith.constant 1 : index
    %20 = vector.load %arg5[%c0_5, %c1] : memref<32x4xf32, #tpu.memory_space<vmem>>, vector<32x1xf32>
    %cst = arith.constant dense<0.000000e+00> : vector<32xf32>
    %21 = vector.multi_reduction <add>, %18, %cst [1] : vector<32x256xf32> to vector<32xf32>
    %22 = vector.shape_cast %21 : vector<32xf32> to vector<32x1xf32>
    %cst_6 = arith.constant 3.906250e-03 : f32
    %23 = vector.broadcast %cst_6 : f32 to vector<32x1xf32>
    %24 = arith.mulf %22, %23 : vector<32x1xf32>
    %25 = vector.broadcast %24 : vector<32x1xf32> to vector<32x256xf32>
    %26 = arith.subf %18, %25 : vector<32x256xf32>
    %27 = arith.mulf %26, %26 : vector<32x256xf32>
    %cst_7 = arith.constant dense<0.000000e+00> : vector<32xf32>
    %28 = vector.multi_reduction <add>, %27, %cst_7 [1] : vector<32x256xf32> to vector<32xf32>
    %29 = vector.shape_cast %28 : vector<32xf32> to vector<32x1xf32>
    %cst_8 = arith.constant 3.906250e-03 : f32
    %30 = vector.broadcast %cst_8 : f32 to vector<32x1xf32>
    %31 = arith.mulf %29, %30 : vector<32x1xf32>
    %cst_9 = arith.constant 9.99999974E-6 : f32
    %32 = vector.broadcast %cst_9 : f32 to vector<32x1xf32>
    %33 = arith.addf %31, %32 : vector<32x1xf32>
    %34 = math.rsqrt %33 : vector<32x1xf32>
    %35 = arith.mulf %19, %34 : vector<32x1xf32>
    %36 = vector.broadcast %35 : vector<32x1xf32> to vector<32x256xf32>
    %37 = arith.mulf %26, %36 : vector<32x256xf32>
    %38 = vector.broadcast %20 : vector<32x1xf32> to vector<32x256xf32>
    %39 = arith.addf %37, %38 : vector<32x256xf32>
    %cst_10 = arith.constant 0.000000e+00 : f32
    %40 = vector.broadcast %cst_10 : f32 to vector<32x256xf32>
    %41 = arith.maximumf %39, %40 : vector<32x256xf32>
    %c0_11 = arith.constant 0 : index
    %c0_12 = arith.constant 0 : index
    %42 = vector.load %arg3[%c0_11, %c0_12] : memref<32x32xf32, #tpu.memory_space<vmem>>, vector<32x32xf32>
    %43 = arith.truncf %42 : vector<32x32xf32> to vector<32x32xbf16>
    %44 = arith.truncf %41 : vector<32x256xf32> to vector<32x256xbf16>
    %cst_13 = arith.constant dense<0.000000e+00> : vector<32x256xf32>
    %45 = tpu.matmul %43, %44, %cst_13 {dimension_numbers = #tpu.dot_dimension_numbers<[1], [0], [0], [1], [0, 0, 1, 1], [], []>} : vector<32x32xbf16>, vector<32x256xbf16>, vector<32x256xf32> -> vector<32x256xf32>
    %c0_14 = arith.constant 0 : index
    %c2 = arith.constant 2 : index
    %46 = vector.load %arg5[%c0_14, %c2] : memref<32x4xf32, #tpu.memory_space<vmem>>, vector<32x1xf32>
    %c0_15 = arith.constant 0 : index
    %c3 = arith.constant 3 : index
    %47 = vector.load %arg5[%c0_15, %c3] : memref<32x4xf32, #tpu.memory_space<vmem>>, vector<32x1xf32>
    %cst_16 = arith.constant dense<0.000000e+00> : vector<32xf32>
    %48 = vector.multi_reduction <add>, %45, %cst_16 [1] : vector<32x256xf32> to vector<32xf32>
    %49 = vector.shape_cast %48 : vector<32xf32> to vector<32x1xf32>
    %cst_17 = arith.constant 3.906250e-03 : f32
    %50 = vector.broadcast %cst_17 : f32 to vector<32x1xf32>
    %51 = arith.mulf %49, %50 : vector<32x1xf32>
    %52 = vector.broadcast %51 : vector<32x1xf32> to vector<32x256xf32>
    %53 = arith.subf %45, %52 : vector<32x256xf32>
    %54 = arith.mulf %53, %53 : vector<32x256xf32>
    %cst_18 = arith.constant dense<0.000000e+00> : vector<32xf32>
    %55 = vector.multi_reduction <add>, %54, %cst_18 [1] : vector<32x256xf32> to vector<32xf32>
    %56 = vector.shape_cast %55 : vector<32xf32> to vector<32x1xf32>
    %cst_19 = arith.constant 3.906250e-03 : f32
    %57 = vector.broadcast %cst_19 : f32 to vector<32x1xf32>
    %58 = arith.mulf %56, %57 : vector<32x1xf32>
    %cst_20 = arith.constant 9.99999974E-6 : f32
    %59 = vector.broadcast %cst_20 : f32 to vector<32x1xf32>
    %60 = arith.addf %58, %59 : vector<32x1xf32>
    %61 = math.rsqrt %60 : vector<32x1xf32>
    %62 = arith.mulf %46, %61 : vector<32x1xf32>
    %63 = vector.broadcast %62 : vector<32x1xf32> to vector<32x256xf32>
    %64 = arith.mulf %53, %63 : vector<32x256xf32>
    %65 = vector.broadcast %47 : vector<32x1xf32> to vector<32x256xf32>
    %66 = arith.addf %64, %65 : vector<32x256xf32>
    %cst_21 = arith.constant 0.000000e+00 : f32
    %67 = vector.broadcast %cst_21 : f32 to vector<32x256xf32>
    %68 = arith.maximumf %66, %67 : vector<32x256xf32>
    %c0_22 = arith.constant 0 : index
    %c0_23 = arith.constant 0 : index
    %69 = vector.load %arg4[%c0_22, %c0_23] : memref<2x32xf32, #tpu.memory_space<vmem>>, vector<2x32xf32>
    %70 = arith.truncf %69 : vector<2x32xf32> to vector<2x32xbf16>
    %71 = arith.truncf %68 : vector<32x256xf32> to vector<32x256xbf16>
    %cst_24 = arith.constant dense<0.000000e+00> : vector<2x256xf32>
    %72 = tpu.matmul %70, %71, %cst_24 {dimension_numbers = #tpu.dot_dimension_numbers<[1], [0], [0], [1], [0, 0, 1, 1], [], []>} : vector<2x32xbf16>, vector<32x256xbf16>, vector<2x256xf32> -> vector<2x256xf32>
    %c0_25 = arith.constant 0 : index
    %c0_26 = arith.constant 0 : index
    %73 = vector.load %arg6[%c0_25, %c0_26] : memref<2x1xf32, #tpu.memory_space<vmem>>, vector<2x1xf32>
    %74 = vector.broadcast %73 : vector<2x1xf32> to vector<2x256xf32>
    %75 = arith.addf %72, %74 : vector<2x256xf32>
    %c0_27 = arith.constant 0 : index
    %c0_28 = arith.constant 0 : index
    %76 = vector.load %arg7[%c0_27, %c0_28] : memref<2x256xf32, #tpu.memory_space<vmem>>, vector<2x256xf32>
    tpu.vector_store %arg7[%c0_27, %c0_28], %75 {strides = array<i32>} : memref<2x256xf32, #tpu.memory_space<vmem>>, vector<2x256xf32>,
    return
  }
  func.func @transform_0(%arg0: i32) -> (i32, i32) {
    %c0_i32 = arith.constant 0 : i32
    %c0_i32_0 = arith.constant 0 : i32
    %c0_i32_1 = arith.constant 0 : i32
    return %c0_i32, %c0_i32_0 : i32, i32
  }
  func.func @transform_1(%arg0: i32) -> (i32, i32) {
    %c0_i32 = arith.constant 0 : i32
    %c0_i32_0 = arith.constant 0 : i32
    %c0_i32_1 = arith.constant 0 : i32
    return %c0_i32, %c0_i32_0 : i32, i32
  }
  func.func @transform_2(%arg0: i32) -> (i32, i32) {
    %c0_i32 = arith.constant 0 : i32
    %c0_i32_0 = arith.constant 0 : i32
    %c0_i32_1 = arith.constant 0 : i32
    return %c0_i32, %c0_i32_0 : i32, i32
  }
  func.func @transform_3(%arg0: i32) -> (i32, i32) {
    %c0_i32 = arith.constant 0 : i32
    %c0_i32_0 = arith.constant 0 : i32
    %c0_i32_1 = arith.constant 0 : i32
    return %c0_i32, %c0_i32_0 : i32, i32
  }
  func.func @transform_4(%arg0: i32) -> (i32, i32) {
    %c0_i32 = arith.constant 0 : i32
    %c0_i32_0 = arith.constant 0 : i32
    %c0_i32_1 = arith.constant 0 : i32
    return %c0_i32, %c0_i32_0 : i32, i32
  }
  func.func @transform_5(%arg0: i32) -> (i32, i32) {
    %c0_i32 = arith.constant 0 : i32
    %c0_i32_0 = arith.constant 0 : i32
    %c0_i32_1 = arith.constant 0 : i32
    return %c0_i32, %c0_i32_0 : i32, i32
  }
  func.func @transform_6(%arg0: i32) -> (i32, i32) {
    %c0_i32 = arith.constant 0 : i32
    %c0_i32_0 = arith.constant 0 : i32
    %c0_i32_1 = arith.constant 0 : i32
    return %c0_i32, %c0_i32_0 : i32, i32
  }
}

</mosaic_0001>

<bundles_post_ra>
// kernel: tpu_custom_call.1
= control target key start
LH: loop header
LB: loop body
LE: loop exit
PB: predicated region body
PF: predicated region fallthrough
CT: control target
= control target key end

     0   :  { %v658_v1 = vmov 1   ;;  %v659_v2 = vmov 0   ;;  %s881_s0 = inlined_call_operand.vmem [shape: f32[3,256], index: 0, kind: input, shape index: {}]   ;;  %s882_s1 = inlined_call_operand.vmem [shape: f32[32,3], index: 1, kind: input, shape index: {}]   ;;  %s883_s2 = inlined_call_operand.vmem [shape: f32[32,32], index: 2, kind: input, shape index: {}]   ;;  %s884_s3 = inlined_call_operand.vmem [shape: f32[2,32], index: 3, kind: input, shape index: {}]   ;;  %s885_s4 = inlined_call_operand.vmem [shape: f32[32,4], index: 4, kind: input, shape index: {}]   ;;  %s886_s5 = inlined_call_operand.vmem [shape: f32[2,1], index: 5, kind: input, shape index: {}]   ;;  %s887_s6 = inlined_call_operand.hbm [shape: f32[2,256], index: 6, kind: output, shape index: {}]  }
   0x1   :  { %v28_v0 = vld [vmem:[%s882_s1 + $0x10] sm:$0xff]  ;;  %592 = vset.pattern.permute.xlu1 %v658_v1  ;;  %591 = vset.pattern.permute.xlu0 %v659_v2 }
   0x2   :  { %11 = vsyncpa [#allocation3], 0  ;;  %74 = vperm.xlu1 %592, %v28_v0   ;;  %42 = vperm.xlu0 %591, %v28_v0   ;;  %v660_v3 = vmov 2   ;;  %v29_v4 = vld [vmem:[%s882_s1 + $0x18] sm:$0xff]  ;;  %v26_v5 = vld [vmem:[%s882_s1] sm:$0xff]  ;;  %vm315_vm12 = vcmask 261120  }
   0x3   :  { %593 = vset.pattern.permute.xlu2 %v660_v3  ;;  %v27_v6 = vld [vmem:[%s882_s1 + $0x8] sm:$0xff]  ;;  %v25_v7 = vld [vmem:[%s881_s0] sm:$0x77]  ;;  %s662_s22 = smov [#allocation2]   ;;  %s571_s26 = sshll.u32 %s887_s6, 4  ;;  %s572_s26 = int_to_ptr.hbm [resolvable:$true] %s571_s26 }
   0x4   :  { %112 = vperm.xlu2 %593, %v28_v0   ;;  %v119_v8 = vperm.slane %v25_v7, 2  ;;  %v120_v9 = vperm.slane %v25_v7, 6  ;;  %v81_v10 = vperm.slane %v25_v7, 1  ;;  %v82_v11 = vperm.slane %v25_v7, 5  ;;  %s569_s23 = sshll.u32 %s662_s22, 4  ;;  %s570_s23 = int_to_ptr.vmem [resolvable:$true] %s569_s23 }
   0x5   :  { %v51_v12 = vperm.slane %v25_v7, 0  ;;  %v52_v13 = vperm.slane %v25_v7, 4 }
   0x6   :  { %v123_v15 = vperm.slane %v119_v8, 2  ;;  %v124_v16 = vperm.slane %v120_v9, 2  ;;  %v85_v17 = vperm.slane %v81_v10, 1  ;;  %v86_v18 = vperm.slane %v82_v11, 1 }
   0x7   :  { %v55_v19 = vperm.slane %v51_v12, 0  ;;  %v56_v20 = vperm.slane %v52_v13, 0 }
   0xa   :  { %78 = vperm.xlu1 %592, %v29_v4   ;;  %47 = vperm.xlu0 %591, %v29_v4  }
   0xc   :  { %116 = vperm.xlu2 %593, %v29_v4  }
  0x12   :  { %594 = vset.pattern.permute.xlu1 %v659_v2  ;;  %32 = vperm.xlu0 %591, %v26_v5  }
  0x13   :  { %37 = vperm.xlu1 %594, %v27_v6  }
  0x14   :  { %595 = vset.pattern.permute.xlu2 %v658_v1 }
  0x15   :  { %66 = vperm.xlu2 %595, %v26_v5  }
  0x1a   :  { %596 = vset.pattern.permute.xlu0 %v658_v1 }
  0x1b   :  { %597 = vset.pattern.permute.xlu1 %v660_v3  ;;  %70 = vperm.xlu0 %596, %v27_v6  }
  0x1c   :  { %104 = vperm.xlu1 %597, %v26_v5  }
  0x1d   :  { %598 = vset.pattern.permute.xlu2 %v660_v3 }
  0x1e   :  { %108 = vperm.xlu2 %598, %v27_v6  }
  0x23   :  { %600 = vset.pattern.permute.xlu0 %v659_v2 }
  0x24   :  { %601 = vset.pattern.permute.xlu1 %v658_v1 }
  0x26   :  { %599 = vset.pattern.permute.xlu2 %v659_v2 }
  0x5e   :  { %v113_v14 = vpop.permute.xlu2 %112 }
  0x5f   :  { %v129_v21 = vmul.f32 %v123_v15, %v113_v14  ;;  %v130_v22 = vmul.f32 %v124_v16, %v113_v14 }
  0x66   :  { %v117_v31 = vpop.permute.xlu2 %116 }
  0x67   :  { %v131_v41 = vmul.f32 %v123_v15, %v117_v31  ;;  %v132_v42 = vmul.f32 %v124_v16, %v117_v31 }
  0x6f   :  { %v67_v47 = vpop.permute.xlu2 %66 }
  0x70   :  { %v87_v52 = vmul.f32 %v85_v17, %v67_v47  ;;  %v88_v53 = vmul.f32 %v86_v18, %v67_v47 }
  0x74   :  { %v75_v23 = vpop.permute.xlu1 %74  ;;  %v43_v24 = vpop.permute.xlu0 %42 }
  0x75   :  { %v91_v25 = vmul.f32 %v85_v17, %v75_v23  ;;  %v92_v26 = vmul.f32 %v86_v18, %v75_v23  ;;  %v61_v27 = vmul.f32 %v55_v19, %v43_v24  ;;  %v62_v28 = vmul.f32 %v56_v20, %v43_v24 }
  0x77   :  { %v99_v29 = vadd.f32 %v91_v25, %v61_v27  ;;  %v100_v30 = vadd.f32 %v92_v26, %v62_v28 }
  0x78   :  { %v109_v51 = vpop.permute.xlu2 %108 }
  0x79   :  { %v137_v32 = vadd.f32 %v129_v21, %v99_v29  ;;  %v138_v33 = vadd.f32 %v130_v22, %v100_v30  ;;  %v127_v57 = vmul.f32 %v123_v15, %v109_v51  ;;  %v128_v58 = vmul.f32 %v124_v16, %v109_v51 }
  0x7b   :  { %v151_v34 = vadd.f32 %v138_v33, %v137_v32 }
  0x7c   :  { %v79_v35 = vpop.permute.xlu1 %78  ;;  %v48_v36 = vpop.permute.xlu0 %47 }
  0x7d   :  { %v93_v37 = vmul.f32 %v85_v17, %v79_v35  ;;  %v94_v38 = vmul.f32 %v86_v18, %v79_v35  ;;  %v63_v39 = vmul.f32 %v55_v19, %v48_v36  ;;  %v64_v40 = vmul.f32 %v56_v20, %v48_v36  ;;  %152 = vadd.xlane.f32.xlu1 %v151_v34 }
  0x7f   :  { %v101_v43 = vadd.f32 %v93_v37, %v63_v39  ;;  %v102_v44 = vadd.f32 %v94_v38, %v64_v40 }
  0x81   :  { %v139_v45 = vadd.f32 %v131_v41, %v101_v43  ;;  %v140_v46 = vadd.f32 %v132_v42, %v102_v44  ;;  %v759_v43 = vld [vmem:[%s885_s4 + $0x10] sm:$0xff] }
  0x83   :  { %v154_v48 = vadd.f32 %v140_v46, %v139_v45 }
  0x84   :  { %v33_v49 = vpop.permute.xlu0 %32 }
  0x85   :  { %v38_v50 = vpop.permute.xlu1 %37  ;;  %155 = vadd.xlane.f32.xlu2 %v154_v48  ;;  %v57_v54 = vmul.f32 %v55_v19, %v33_v49  ;;  %v58_v55 = vmul.f32 %v56_v20, %v33_v49 }
  0x86   :  { %v59_v59 = vmul.f32 %v55_v19, %v38_v50  ;;  %v60_v60 = vmul.f32 %v56_v20, %v38_v50 }
  0x87   :  { %v95_v0 = vadd.f32 %v87_v52, %v57_v54  ;;  %v96_v4 = vadd.f32 %v88_v53, %v58_v55 }
  0x8d   :  { %v71_v56 = vpop.permute.xlu0 %70 }
  0x8e   :  { %v89_v61 = vmul.f32 %v85_v17, %v71_v56  ;;  %v90_v62 = vmul.f32 %v86_v18, %v71_v56  ;;  %v105_v63 = vpop.permute.xlu1 %104 }
  0x8f   :  { %v125_v5 = vmul.f32 %v123_v15, %v105_v63  ;;  %v126_v6 = vmul.f32 %v124_v16, %v105_v63 }
  0x90   :  { %v97_v7 = vadd.f32 %v89_v61, %v59_v59  ;;  %v98_v8 = vadd.f32 %v90_v62, %v60_v60 }
  0x91   :  { %v133_v9 = vadd.f32 %v125_v5, %v95_v0  ;;  %v134_v10 = vadd.f32 %v126_v6, %v96_v4 }
  0x92   :  { %v135_v11 = vadd.f32 %v127_v57, %v97_v7  ;;  %v136_v12 = vadd.f32 %v128_v58, %v98_v8  ;;  %v767_v8 = vld [vmem:[%s885_s4 + $0x18] sm:$0xff] }
  0x93   :  { %v145_v13 = vadd.f32 %v134_v10, %v133_v9 }
  0x94   :  { %v148_v14 = vadd.f32 %v136_v12, %v135_v11 }
  0x95   :  { %146 = vadd.xlane.f32.xlu0 %v145_v13 }
  0x96   :  { %149 = vadd.xlane.f32.xlu2 %v148_v14 }
  0xf0   :  { %v153_v21 = vpop.xlane.xlu1 %152 }
  0xf1   :  { %v159_v19 = vmul.f32 0.00390625, %v153_v21 }
  0xf3   :  { %v724_v20 = vsub.f32 %v137_v32, %v159_v19  ;;  %v726_v17 = vsub.f32 %v138_v33, %v159_v19 }
  0xf5   :  { %v173_v15 = vmul.f32 %v724_v20, %v724_v20  ;;  %v174_v16 = vmul.f32 %v726_v17, %v726_v17 }
  0xf7   :  { %v183_v18 = vadd.f32 %v174_v16, %v173_v15 }
  0xf8   :  { %v156_v22 = vpop.xlane.xlu2 %155 }
  0xf9   :  { %v160_v23 = vmul.f32 0.00390625, %v156_v22  ;;  %184 = vadd.xlane.f32.xlu1 %v183_v18 }
  0xfb   :  { %v732_v24 = vsub.f32 %v139_v45, %v160_v23  ;;  %v734_v25 = vsub.f32 %v140_v46, %v160_v23 }
  0xfd   :  { %v175_v26 = vmul.f32 %v732_v24, %v732_v24  ;;  %v176_v27 = vmul.f32 %v734_v25, %v734_v25 }
  0xff   :  { %v186_v28 = vadd.f32 %v176_v27, %v175_v26  ;;  %v777_v26 = vld [vmem:[%s885_s4] sm:$0xff] }
 0x101   :  { %187 = vadd.xlane.f32.xlu2 %v186_v28  ;;  %v782_v28 = vld [vmem:[%s885_s4 + $0x8] sm:$0xff] }
 0x108   :  { %v147_v29 = vpop.xlane.xlu0 %146 }
 0x109   :  { %v157_v30 = vmul.f32 0.00390625, %v147_v29  ;;  %v150_v31 = vpop.xlane.xlu2 %149 }
 0x10a   :  { %v158_v32 = vmul.f32 0.00390625, %v150_v31 }
 0x10b   :  { %v740_v33 = vsub.f32 %v133_v9, %v157_v30  ;;  %v742_v34 = vsub.f32 %v134_v10, %v157_v30 }
 0x10c   :  { %v744_v35 = vsub.f32 %v135_v11, %v158_v32  ;;  %v746_v36 = vsub.f32 %v136_v12, %v158_v32 }
 0x10d   :  { %v169_v37 = vmul.f32 %v740_v33, %v740_v33  ;;  %v170_v38 = vmul.f32 %v742_v34, %v742_v34 }
 0x10e   :  { %v171_v39 = vmul.f32 %v744_v35, %v744_v35  ;;  %v172_v40 = vmul.f32 %v746_v36, %v746_v36 }
 0x10f   :  { %v177_v41 = vadd.f32 %v170_v38, %v169_v37 }
 0x110   :  { %v180_v42 = vadd.f32 %v172_v40, %v171_v39 }
 0x111   :  { %178 = vadd.xlane.f32.xlu0 %v177_v41 }
 0x112   :  { %181 = vadd.xlane.f32.xlu1 %v180_v42 }
 0x12b   :  { %281 = vperm.xlu1 %601, %v759_v43  }
 0x133   :  { %603 = vset.pattern.permute.xlu1 %v659_v2 }
 0x16c   :  { %v185_v44 = vpop.xlane.xlu1 %184 }
 0x16d   :  { %v191_v45 = vmul.f32 0.00390625, %v185_v44 }
 0x16f   :  { %v195_v46 = vadd.f32 1e-05, %v191_v45 }
 0x171   :  { %616 = vrsqrt.f32 %v195_v46  ;;  %vm223_vm1 = vweird.f32 %v195_v46 }
 0x174   :  { %v188_v47 = vpop.xlane.xlu2 %187 }
 0x175   :  { %v192_v48 = vmul.f32 0.00390625, %v188_v47 }
 0x177   :  { %v617_v49 = vpop.eup %616  ;;  %v196_v50 = vadd.f32 1e-05, %v192_v48 }
 0x178   :  { %v218_v51 = vmul.f32 %v617_v49, %v195_v46  ;;  %vm224_vm0 = vweird.f32 %v617_v49 }
 0x179   :  { %618 = vrsqrt.f32 %v196_v50  ;;  %vm225_vm2 = vmor %vm223_vm1, %vm224_vm0  ;;  %vm233_vm4 = vweird.f32 %v196_v50 }
 0x17a   :  { %v219_v52 = vmul.f32 %v617_v49, %v218_v51 }
 0x17c   :  { %v220_v53 = vmul.f32 0.5, %v219_v52 }
 0x17e   :  { %v221_v54 = vsub.f32 1.5, %v220_v53 }
 0x17f   :  { %v619_v55 = vpop.eup %618 }
 0x180   :  { %v228_v56 = vmul.f32 %v619_v55, %v196_v50  ;;  %v222_v57 = vmul.f32 %v617_v49, %v221_v54  ;;  %vm234_vm3 = vweird.f32 %v619_v55 }
 0x181   :  { %vm235_vm5 = vmor %vm233_vm4, %vm234_vm3 }
 0x182   :  { %v229_v58 = vmul.f32 %v619_v55, %v228_v56  ;;  %v226_v59 = vsel %vm225_vm2, %v617_v49, %v222_v57 }
 0x183   :  { %v239_v60 = vmul.f32 %v226_v59, %v759_v43 }
 0x184   :  { %v230_v61 = vmul.f32 0.5, %v229_v58  ;;  %v179_v62 = vpop.xlane.xlu0 %178 }
 0x185   :  { %v189_v63 = vmul.f32 0.00390625, %v179_v62  ;;  %253 = vperm.xlu2 %599, %v239_v60   ;;  %v182_v0 = vpop.xlane.xlu1 %181 }
 0x186   :  { %v231_v4 = vsub.f32 1.5, %v230_v61  ;;  %v190_v5 = vmul.f32 0.00390625, %v182_v0 }
 0x187   :  { %v193_v6 = vadd.f32 1e-05, %v189_v63 }
 0x188   :  { %v194_v7 = vadd.f32 1e-05, %v190_v5  ;;  %v232_v9 = vmul.f32 %v619_v55, %v231_v4 }
 0x189   :  { %620 = vrsqrt.f32 %v193_v6  ;;  %vm203_vm8 = vweird.f32 %v193_v6 }
 0x18a   :  { %622 = vrsqrt.f32 %v194_v7  ;;  %v236_v10 = vsel %vm235_vm5, %v619_v55, %v232_v9  ;;  %vm213_vm10 = vweird.f32 %v194_v7 }
 0x18b   :  { %v240_v11 = vmul.f32 %v236_v10, %v767_v8  ;;  %v308_v10 = vld [vmem:[%s883_s2 + $0x18] sm:$0xff] }
 0x18d   :  { %258 = vperm.xlu0 %600, %v240_v11   ;;  %602 = vset.pattern.permute.xlu2 %v658_v1 }
 0x18e   :  { %286 = vperm.xlu2 %602, %v767_v8  }
 0x18f   :  { %v621_v12 = vpop.eup %620 }
 0x190   :  { %v623_v13 = vpop.eup %622  ;;  %v198_v14 = vmul.f32 %v621_v12, %v193_v6  ;;  %vm204_vm6 = vweird.f32 %v621_v12 }
 0x191   :  { %v208_v21 = vmul.f32 %v623_v13, %v194_v7  ;;  %vm214_vm7 = vweird.f32 %v623_v13  ;;  %vm205_vm9 = vmor %vm203_vm8, %vm204_vm6  ;;  %v305_v7 = vld [vmem:[%s883_s2] sm:$0xff] }
 0x192   :  { %v199_v19 = vmul.f32 %v621_v12, %v198_v14  ;;  %vm215_vm11 = vmor %vm213_vm10, %vm214_vm7 }
 0x193   :  { %v209_v15 = vmul.f32 %v623_v13, %v208_v21 }
 0x194   :  { %v200_v16 = vmul.f32 0.5, %v199_v19 }
 0x195   :  { %v210_v18 = vmul.f32 0.5, %v209_v15  ;;  %608 = vset.pattern.permute.xlu0 %v660_v3 }
 0x196   :  { %v201_v22 = vsub.f32 1.5, %v200_v16  ;;  %605 = vset.pattern.permute.xlu2 %v659_v2 }
 0x197   :  { %v211_v23 = vsub.f32 1.5, %v210_v18 }
 0x198   :  { %v202_v27 = vmul.f32 %v621_v12, %v201_v22 }
 0x199   :  { %v212_v29 = vmul.f32 %v623_v13, %v211_v23 }
 0x19a   :  { %v206_v30 = vsel %vm205_vm9, %v621_v12, %v202_v27  ;;  %vm560_vm9 = vcmask 1041408  }
 0x19b   :  { %v237_v31 = vmul.f32 %v206_v30, %v777_v26  ;;  %v216_v32 = vsel %vm215_vm11, %v623_v13, %v212_v29 }
 0x19c   :  { %v238_v37 = vmul.f32 %v216_v32, %v782_v28 }
 0x19d   :  { %243 = vperm.xlu1 %603, %v237_v31   ;;  %v282_v41 = vpop.permute.xlu1 %281 }
 0x19e   :  { %248 = vperm.xlu2 %605, %v238_v37  }
 0x1a5   :  { %604 = vset.pattern.permute.xlu1 %v658_v1 }
 0x1a6   :  { %606 = vset.pattern.permute.xlu2 %v658_v1  ;;  %271 = vperm.xlu1 %604, %v777_v26  }
 0x1a7   :  { %276 = vperm.xlu2 %606, %v782_v28  }
 0x1af   :  { %607 = vset.pattern.permute.xlu2 %v660_v3 }
 0x1df   :  { %v254_v38 = vpop.permute.xlu2 %253 }
 0x1e0   :  { %v265_v39 = vmul.f32 %v254_v38, %v724_v20  ;;  %v266_v40 = vmul.f32 %v254_v38, %v726_v17 }
 0x1e2   :  { %v293_v44 = vadd.f32 %v282_v41, %v265_v39  ;;  %v294_v45 = vadd.f32 %v282_v41, %v266_v40 }
 0x1e4   :  { %v301_v50 = vmax.f32 %v293_v44, 0.0  ;;  %v302_v52 = vmax.f32 %v294_v45, 0.0 }
 0x1e8   :  { %v287_v46 = vpop.permute.xlu2 %286 }
 0x1f8   :  { %v249_v20 = vpop.permute.xlu2 %248 }
 0x1f9   :  { %v263_v57 = vmul.f32 %v249_v20, %v744_v35  ;;  %v264_v58 = vmul.f32 %v249_v20, %v746_v36  ;;  %v306_v35 = vld [vmem:[%s883_s2 + $0x8] sm:$0xff] }
 0x1ff   :  { %v259_v42 = vpop.permute.xlu0 %258 }
 0x200   :  { %v267_v47 = vmul.f32 %v259_v42, %v732_v24  ;;  %v268_v1 = vmul.f32 %v259_v42, %v734_v25 }
 0x201   :  { %v277_v56 = vpop.permute.xlu2 %276 }
 0x202   :  { %v295_v48 = vadd.f32 %v287_v46, %v267_v47  ;;  %v296_v49 = vadd.f32 %v287_v46, %v268_v1  ;;  %v291_v24 = vadd.f32 %v277_v56, %v263_v57  ;;  %v292_v59 = vadd.f32 %v277_v56, %v264_v58 }
 0x204   :  { %v303_v51 = vmax.f32 %v295_v48, 0.0  ;;  %v304_v53 = vmax.f32 %v296_v49, 0.0  ;;  %v299_v0 = vmax.f32 %v291_v24, 0.0  ;;  %v300_v4 = vmax.f32 %v292_v59, 0.0 }
 0x205   :  { %v661_v59 = vmov 3  }
 0x206   :  { %v313_v54 = vpack.c.bf16 %v303_v51, %v301_v50  ;;  %v314_v55 = vpack.c.bf16 %v304_v53, %v302_v52  ;;  %609 = vset.pattern.permute.xlu1 %v661_v59 }
 0x208   :  { %328 = vmatpush.bf16.msra.mxu0 %v313_v54  ;;  %347 = vmatpush.bf16.msra.mxu1 %v314_v55 }
 0x20f   :  { %v244_v17 = vpop.permute.xlu1 %243 }
 0x210   :  { %v261_v25 = vmul.f32 %v244_v17, %v740_v33  ;;  %v262_v60 = vmul.f32 %v244_v17, %v742_v34  ;;  %v309_v33 = vpack.c.bf16 %v306_v35, %v305_v7  ;;  %v307_v34 = vld [vmem:[%s883_s2 + $0x10] sm:$0xff] }
 0x211   :  { %v310_v11 = vpack.c.bf16 %v308_v10, %v307_v34 }
 0x218   :  { %v272_v61 = vpop.permute.xlu1 %271 }
 0x219   :  { %v289_v62 = vadd.f32 %v272_v61, %v261_v25  ;;  %v290_v63 = vadd.f32 %v272_v61, %v262_v60 }
 0x21b   :  { %v297_v5 = vmax.f32 %v289_v62, 0.0  ;;  %v298_v6 = vmax.f32 %v290_v63, 0.0 }
 0x21d   :  { %v311_v36 = vpack.c.bf16 %v299_v0, %v297_v5  ;;  %v312_v9 = vpack.c.bf16 %v300_v4, %v298_v6 }
 0x21f   :  { %329 = vmatpush.bf16.msra.mxu0 %v311_v36  ;;  %348 = vmatpush.bf16.msra.mxu1 %v312_v9 }
 0x222   :  { %580 = vmatmul.msk.bf16.vlgmr.msra.gmra.mxu0 %vm315_vm12, %v309_v33  ;;  %582 = vmatmul.msk.bf16.vlgmr.msra.gmra.mxu1 %vm315_vm12, %v309_v33 }
 0x232   :  { %581 = vmatmul.msk.bf16.gmra.mxu0 %vm315_vm12, %v310_v11  ;;  %583 = vmatmul.msk.bf16.gmra.mxu1 %vm315_vm12, %v310_v11 }
 0x29f   :  { %v331_v12 = vpop.f32.mrf.mxu0  ;;  %v350_v13 = vpop.f32.mrf.mxu1 }
 0x2a0   :  { %v360_v14 = vadd.f32 %v350_v13, %v331_v12 }
 0x2a2   :  { %361 = vadd.xlane.f32.xlu2 %v360_v14 }
 0x2a7   :  { %v333_v21 = vpop.f32.mrf.mxu0  ;;  %v352_v19 = vpop.f32.mrf.mxu1 }
 0x2a8   :  { %v363_v29 = vadd.f32 %v352_v19, %v333_v21 }
 0x2af   :  { %v336_v15 = vpop.f32.mrf.mxu0  ;;  %v355_v16 = vpop.f32.mrf.mxu1 }
 0x2b0   :  { %v366_v18 = vadd.f32 %v355_v16, %v336_v15 }
 0x2b2   :  { %367 = vadd.xlane.f32.xlu0 %v366_v18 }
 0x2b7   :  { %v338_v22 = vpop.f32.mrf.mxu0  ;;  %v357_v23 = vpop.f32.mrf.mxu1 }
 0x2b8   :  { %v369_v27 = vadd.f32 %v357_v23, %v338_v22 }
 0x2ba   :  { %364 = vadd.xlane.f32.xlu0 %v363_v29  ;;  %370 = vadd.xlane.f32.xlu1 %v369_v27 }
 0x315   :  { %v362_v30 = vpop.xlane.xlu2 %361 }
 0x316   :  { %v372_v31 = vmul.f32 0.00390625, %v362_v30 }
 0x318   :  { %v815_v32 = vsub.f32 %v331_v12, %v372_v31  ;;  %v817_v37 = vsub.f32 %v350_v13, %v372_v31 }
 0x31a   :  { %v384_v38 = vmul.f32 %v815_v32, %v815_v32  ;;  %v385_v39 = vmul.f32 %v817_v37, %v817_v37 }
 0x31c   :  { %v392_v40 = vadd.f32 %v385_v39, %v384_v38 }
 0x31e   :  { %393 = vadd.xlane.f32.xlu0 %v392_v40 }
 0x325   :  { %v368_v41 = vpop.xlane.xlu0 %367 }
 0x326   :  { %v374_v42 = vmul.f32 0.00390625, %v368_v41 }
 0x328   :  { %v823_v44 = vsub.f32 %v336_v15, %v374_v42  ;;  %v825_v45 = vsub.f32 %v355_v16, %v374_v42 }
 0x32a   :  { %v388_v46 = vmul.f32 %v823_v44, %v823_v44  ;;  %v389_v47 = vmul.f32 %v825_v45, %v825_v45 }
 0x32c   :  { %v398_v1 = vadd.f32 %v389_v47, %v388_v46 }
 0x32d   :  { %v365_v48 = vpop.xlane.xlu0 %364  ;;  %v371_v49 = vpop.xlane.xlu1 %370 }
 0x32e   :  { %v373_v50 = vmul.f32 0.00390625, %v365_v48  ;;  %v375_v51 = vmul.f32 0.00390625, %v371_v49  ;;  %399 = vadd.xlane.f32.xlu1 %v398_v1 }
 0x330   :  { %v831_v52 = vsub.f32 %v333_v21, %v373_v50  ;;  %v833_v53 = vsub.f32 %v352_v19, %v373_v50  ;;  %v835_v54 = vsub.f32 %v338_v22, %v375_v51  ;;  %v837_v55 = vsub.f32 %v357_v23, %v375_v51 }
 0x332   :  { %v386_v20 = vmul.f32 %v831_v52, %v831_v52  ;;  %v387_v17 = vmul.f32 %v833_v53, %v833_v53  ;;  %v390_v56 = vmul.f32 %v835_v54, %v835_v54  ;;  %v391_v57 = vmul.f32 %v837_v55, %v837_v55 }
 0x334   :  { %v395_v58 = vadd.f32 %v387_v17, %v386_v20  ;;  %v401_v24 = vadd.f32 %v391_v57, %v390_v56 }
 0x336   :  { %396 = vadd.xlane.f32.xlu1 %v395_v58  ;;  %402 = vadd.xlane.f32.xlu2 %v401_v24 }
 0x34f   :  { %493 = vperm.xlu1 %609, %v759_v43  }
 0x357   :  { %611 = vset.pattern.permute.xlu1 %v660_v3 }
 0x391   :  { %v394_v25 = vpop.xlane.xlu0 %393 }
 0x392   :  { %v404_v60 = vmul.f32 0.00390625, %v394_v25 }
 0x394   :  { %v408_v61 = vadd.f32 1e-05, %v404_v60 }
 0x396   :  { %624 = vrsqrt.f32 %v408_v61  ;;  %vm418_vm14 = vweird.f32 %v408_v61 }
 0x39c   :  { %v625_v62 = vpop.eup %624 }
 0x39d   :  { %v413_v63 = vmul.f32 %v625_v62, %v408_v61  ;;  %vm419_vm13 = vweird.f32 %v625_v62 }
 0x39e   :  { %vm420_vm15 = vmor %vm418_vm14, %vm419_vm13 }
 0x39f   :  { %v414_v0 = vmul.f32 %v625_v62, %v413_v63 }
 0x3a1   :  { %v415_v4 = vmul.f32 0.5, %v414_v0  ;;  %v400_v5 = vpop.xlane.xlu1 %399 }
 0x3a2   :  { %v406_v6 = vmul.f32 0.00390625, %v400_v5 }
 0x3a3   :  { %v416_v7 = vsub.f32 1.5, %v415_v4 }
 0x3a4   :  { %v410_v35 = vadd.f32 1e-05, %v406_v6 }
 0x3a5   :  { %v417_v36 = vmul.f32 %v625_v62, %v416_v7 }
 0x3a6   :  { %626 = vrsqrt.f32 %v410_v35  ;;  %vm438_vm1 = vweird.f32 %v410_v35 }
 0x3a7   :  { %v421_v9 = vsel %vm420_vm15, %v625_v62, %v417_v36 }
 0x3a8   :  { %v452_v33 = vmul.f32 %v421_v9, %v777_v26 }
 0x3a9   :  { %v403_v34 = vpop.xlane.xlu2 %402  ;;  %v397_v10 = vpop.xlane.xlu1 %396 }
 0x3aa   :  { %v407_v11 = vmul.f32 0.00390625, %v403_v34  ;;  %v405_v12 = vmul.f32 0.00390625, %v397_v10  ;;  %458 = vperm.xlu1 %611, %v452_v33  }
 0x3ac   :  { %v627_v13 = vpop.eup %626  ;;  %v411_v14 = vadd.f32 1e-05, %v407_v11  ;;  %v409_v21 = vadd.f32 1e-05, %v405_v12 }
 0x3ad   :  { %v433_v19 = vmul.f32 %v627_v13, %v410_v35  ;;  %vm439_vm0 = vweird.f32 %v627_v13 }
 0x3ae   :  { %628 = vrsqrt.f32 %v411_v14  ;;  %vm440_vm2 = vmor %vm438_vm1, %vm439_vm0  ;;  %vm448_vm4 = vweird.f32 %v411_v14  ;;  %vm428_vm7 = vweird.f32 %v409_v21 }
 0x3af   :  { %v434_v15 = vmul.f32 %v627_v13, %v433_v19  ;;  %630 = vrsqrt.f32 %v409_v21 }
 0x3b1   :  { %v435_v16 = vmul.f32 0.5, %v434_v15 }
 0x3b2   :  { %613 = vset.pattern.permute.xlu1 %v661_v59 }
 0x3b3   :  { %v436_v18 = vsub.f32 1.5, %v435_v16  ;;  %485 = vperm.xlu1 %613, %v777_v26  }
 0x3b4   :  { %v629_v22 = vpop.eup %628 }
 0x3b5   :  { %v631_v23 = vpop.eup %630  ;;  %v443_v27 = vmul.f32 %v629_v22, %v411_v14  ;;  %v437_v29 = vmul.f32 %v627_v13, %v436_v18  ;;  %vm449_vm3 = vweird.f32 %v629_v22 }
 0x3b6   :  { %v423_v30 = vmul.f32 %v631_v23, %v409_v21  ;;  %vm450_vm5 = vmor %vm448_vm4, %vm449_vm3  ;;  %vm429_vm6 = vweird.f32 %v631_v23 }
 0x3b7   :  { %v444_v31 = vmul.f32 %v629_v22, %v443_v27  ;;  %v441_v38 = vsel %vm440_vm2, %v627_v13, %v437_v29  ;;  %vm430_vm8 = vmor %vm428_vm7, %vm429_vm6 }
 0x3b8   :  { %v424_v39 = vmul.f32 %v631_v23, %v423_v30  ;;  %v454_v40 = vmul.f32 %v441_v38, %v759_v43 }
 0x3b9   :  { %v445_v41 = vmul.f32 0.5, %v444_v31 }
 0x3ba   :  { %468 = vperm.xlu2 %607, %v454_v40   ;;  %v425_v46 = vmul.f32 0.5, %v424_v39 }
 0x3bb   :  { %v446_v42 = vsub.f32 1.5, %v445_v41 }
 0x3bc   :  { %v426_v26 = vsub.f32 1.5, %v425_v46 }
 0x3bd   :  { %v447_v47 = vmul.f32 %v629_v22, %v446_v42 }
 0x3be   :  { %v427_v49 = vmul.f32 %v631_v23, %v426_v26 }
 0x3bf   :  { %v451_v1 = vsel %vm450_vm5, %v629_v22, %v447_v47 }
 0x3c0   :  { %v455_v48 = vmul.f32 %v451_v1, %v767_v8  ;;  %v431_v43 = vsel %vm430_vm8, %v631_v23, %v427_v49 }
 0x3c1   :  { %v453_v50 = vmul.f32 %v431_v43, %v782_v28  ;;  %v494_v17 = vpop.permute.xlu1 %493 }
 0x3c2   :  { %473 = vperm.xlu0 %608, %v455_v48   ;;  %610 = vset.pattern.permute.xlu2 %v661_v59 }
 0x3c3   :  { %497 = vperm.xlu2 %610, %v767_v8   ;;  %v522_v8 = vld [vmem:[%s886_s5] sm:$0x3] }
 0x3ca   :  { %615 = vset.pattern.permute.xlu0 %v659_v2 }
 0x3cb   :  { %612 = vset.pattern.permute.xlu2 %v660_v3  ;;  %525 = vperm.xlu0 %615, %v522_v8  }
 0x3cc   :  { %463 = vperm.xlu2 %612, %v453_v50  }
 0x3d4   :  { %614 = vset.pattern.permute.xlu2 %v661_v59 }
 0x3d5   :  { %489 = vperm.xlu2 %614, %v782_v28  }
 0x414   :  { %v469_v51 = vpop.permute.xlu2 %468 }
 0x415   :  { %v480_v58 = vmul.f32 %v469_v51, %v823_v44  ;;  %v481_v2 = vmul.f32 %v469_v51, %v825_v45 }
 0x417   :  { %v504_v3 = vadd.f32 %v494_v17, %v480_v58  ;;  %v505_v24 = vadd.f32 %v494_v17, %v481_v2 }
 0x419   :  { %v512_v7 = vmax.f32 %v504_v3, 0.0  ;;  %v513_v35 = vmax.f32 %v505_v24, 0.0 }
 0x41c   :  { %v459_v57 = vpop.permute.xlu1 %458 }
 0x41d   :  { %v498_v20 = vpop.permute.xlu2 %497  ;;  %v476_v63 = vmul.f32 %v459_v57, %v815_v32  ;;  %v477_v0 = vmul.f32 %v459_v57, %v817_v37  ;;  %v516_v32 = vld [vmem:[%s884_s3] sm:$0x3] }
 0x41e   :  { %v517_v13 = vpack.c.bf16 %v516_v32, %v516_v32 }
 0x425   :  { %v486_v4 = vpop.permute.xlu1 %485 }
 0x426   :  { %v464_v56 = vpop.permute.xlu2 %463  ;;  %v500_v36 = vadd.f32 %v486_v4, %v476_v63  ;;  %v501_v9 = vadd.f32 %v486_v4, %v477_v0 }
 0x427   :  { %v478_v28 = vmul.f32 %v464_v56, %v831_v52  ;;  %v479_v60 = vmul.f32 %v464_v56, %v833_v53 }
 0x428   :  { %v509_v11 = vmax.f32 %v501_v9, 0.0 }
 0x42f   :  { %v490_v25 = vpop.permute.xlu2 %489 }
 0x430   :  { %v502_v44 = vadd.f32 %v490_v25, %v478_v28  ;;  %v503_v5 = vadd.f32 %v490_v25, %v479_v60 }
 0x432   :  { %v510_v53 = vmax.f32 %v502_v44, 0.0  ;;  %v511_v34 = vmax.f32 %v503_v5, 0.0 }
 0x434   :  { %v474_v59 = vpop.permute.xlu0 %473  ;;  %v519_v12 = vpack.c.bf16 %v511_v34, %v509_v11 }
 0x435   :  { %v482_v61 = vmul.f32 %v474_v59, %v835_v54  ;;  %v483_v62 = vmul.f32 %v474_v59, %v837_v55  ;;  %v508_v55 = vmax.f32 %v500_v36, 0.0 }
 0x437   :  { %v506_v45 = vadd.f32 %v498_v20, %v482_v61  ;;  %v507_v6 = vadd.f32 %v498_v20, %v483_v62  ;;  %v518_v37 = vpack.c.bf16 %v510_v53, %v508_v55 }
 0x439   :  { %v514_v52 = vmax.f32 %v506_v45, 0.0  ;;  %v515_v33 = vmax.f32 %v507_v6, 0.0 }
 0x43b   :  { %v520_v54 = vpack.c.bf16 %v514_v52, %v512_v7  ;;  %v521_v10 = vpack.c.bf16 %v515_v33, %v513_v35 }
 0x43d   :  { %537 = vmatpush.bf16.msra.mxu2 %v520_v54  ;;  %550 = vmatpush.bf16.msra.mxu3 %v521_v10  ;;  %v526_v14 = vpop.permute.xlu0 %525 }
 0x441   :  { %538 = vmatpush.bf16.msra.mxu2 %v518_v37  ;;  %551 = vmatpush.bf16.msra.mxu3 %v519_v12 }
 0x444   :  { %584 = vmatmul.msk.bf16.vlgmr.msra.gmra.mxu2 %vm315_vm12, %v517_v13  ;;  %585 = vmatmul.msk.bf16.vlgmr.msra.gmra.mxu3 %vm315_vm12, %v517_v13 }
 0x4c7   :  { %v540_v21 = vpop.f32.mrf.mxu2  ;;  %v553_v19 = vpop.f32.mrf.mxu3 }
 0x4c8   :  { %v554_v15 = vadd.f32 %v553_v19, %v526_v14  ;;  %v541_v16 = vadd.f32 %v540_v21, %v526_v14 }
 0x4ca   :  { %v559_v18 = vrot.slane %v554_v15, 6 }
 0x4cc   :  { %v561_v22 = vsel %vm560_vm9, %v541_v16, %v559_v18 }
 0x4cd   :  { %563 = vst [vmem:[#allocation2] sm:$0xf] %v561_v22 }
 0x4ce   :  { %574 = dma.vmem_to_hbm [thread:$0]  %s570_s23, 64, %s572_s26, [#allocation3]  }
 0x4cf   :  { %v542_v23 = vpop.f32.mrf.mxu2  ;;  %v555_v27 = vpop.f32.mrf.mxu3 }
 0x4d0   :  { %656 = dma.done.wait [#allocation3], 64  }
 0x4d1   :  { %657 = vsyncadd [#allocation3], 4294967232 }
 0x4d2   :  { %579 = vsyncpa [#allocation3], 1 }

</bundles_post_ra>
